<compile_context>
chip_gen: v5e
topology: v5e:2x2
jax: 0.10.0
libtpu: 0.0.40
codegen_flags: <defaults>
</compile_context>

<pallas_src>
import functools

import jax
import jax.numpy as jnp
from jax.experimental import pallas as pl
from jax.experimental.pallas import tpu as pltpu

LN_EPS = 1e-5  # nn.LayerNorm default


# ------------------------------ kernels ---------------------------------------

def ln_qkv_kernel(x_ref, gamma_ref, beta_ref, wq_ref, wk_ref, wv_ref,
                  q_ref, k_ref, v_ref, *, compute_dtype):
    """Fused LayerNorm (last dim) + Q/K/V projections for one batch element.

    Weight columns were pre-permuted in the wrapper so a later row-major reshape
    of these outputs reproduces torch's qkv.view(B, H, N, 3, Dh) split exactly.
    """
    x = x_ref[0].astype(jnp.float32)                           # (N, D)
    mean = jnp.mean(x, axis=-1, keepdims=True)
    var = jnp.mean((x - mean) ** 2, axis=-1, keepdims=True)    # biased, like torch
    xn = (x - mean) * jax.lax.rsqrt(var + LN_EPS)
    xn = xn * gamma_ref[0] + beta_ref[0]                       # affine, f32 VPU math
    xn = xn.astype(compute_dtype)                              # cast only at MXU input
    q_ref[0] = jnp.dot(xn, wq_ref[...],
                       preferred_element_type=jnp.float32).astype(q_ref.dtype)
    k_ref[0] = jnp.dot(xn, wk_ref[...],
                       preferred_element_type=jnp.float32).astype(k_ref.dtype)
    v_ref[0] = jnp.dot(xn, wv_ref[...],
                       preferred_element_type=jnp.float32).astype(v_ref.dtype)


def attn_proj_kernel(q_ref, k_ref, v_ref, wo_ref, o_ref, *,
                     scale, heads, compute_dtype):
    """All-heads attention + output projection for one batch element.

    q_ref/k_ref/v_ref: (1, H, N, Dh); wo_ref: (H, Dh, D); o_ref: (1, N, D).
    The projection is accumulated per head, so torch's
    transpose(-3,-2).flatten(-2) repacking never materializes.
    """
    # Fold the softmax scale into Q: O(N*Dh) multiplies instead of O(N^2).
    q = (q_ref[0].astype(jnp.float32) * scale).astype(compute_dtype)   # (H, N, Dh)
    k = k_ref[0].astype(compute_dtype)
    v = v_ref[0].astype(compute_dtype)

    # Batched over heads; contracting last dims so K is used in native layout
    # (no explicit k.T / XLU transpose).
    s = jnp.einsum("hnd,hmd->hnm", q, k,
                   preferred_element_type=jnp.float32)                 # (H, N, N) f32
    s = s - jnp.max(s, axis=-1, keepdims=True)                         # stable softmax
    e = jnp.exp(s)
    p = e * pl.reciprocal(jnp.sum(e, axis=-1, keepdims=True))          # exact 1/x
    o = jnp.einsum("hnm,hmd->hnd", p.astype(compute_dtype), v,
                   preferred_element_type=jnp.float32)                 # (H, N, Dh) f32

    # Output projection accumulated per head:
    #   y @ w_out == sum_h  out_h @ w_out[h*Dh:(h+1)*Dh, :]
    n_tok, d_model = o_ref.shape[1], o_ref.shape[2]
    acc = jnp.zeros((n_tok, d_model), jnp.float32)
    for h in range(heads):                                             # unrolled, H is small
        acc = acc + jnp.dot(o[h].astype(compute_dtype), wo_ref[h],
                            preferred_element_type=jnp.float32)
    o_ref[0] = acc.astype(o_ref.dtype)


# ------------------------------ wrapper ----------------------------------------

def attention_forward(x, params, heads, dimheads, *, compute_dtype=jnp.float32):
    B, N, D = x.shape
    HD = heads * dimheads
    scale = float(dimheads) ** -0.5

    # --- one-time weight preprocessing (tiny; no activation data touched) -----
    # torch's qkv.view(B, H, N, 3, Dh) mixes sequence and channel axes.  Grouping
    # w_qkv's columns per (head-block j, q/k/v) and later doing a row-major
    # reshape of the activations reproduces that split exactly with zero
    # activation slicing / transposition.
    w3 = params["w_qkv"].reshape(D, heads, 3, dimheads)
    wq = w3[:, :, 0, :].reshape(D, HD).astype(compute_dtype)
    wk = w3[:, :, 1, :].reshape(D, HD).astype(compute_dtype)
    wv = w3[:, :, 2, :].reshape(D, HD).astype(compute_dtype)
    wo = params["w_out"].reshape(heads, dimheads, D).astype(compute_dtype)
    gamma = params["gamma"].reshape(1, D).astype(jnp.float32)
    beta = params["beta"].reshape(1, D).astype(jnp.float32)

    store_dtype = compute_dtype        # dtype of the q/k/v HBM intermediates

    # --- kernel 1: LayerNorm + QKV, one whole batch element per grid step -----
    qkv_struct = jax.ShapeDtypeStruct((B, N, HD), store_dtype)
    q, k, v = pl.pallas_call(
        functools.partial(ln_qkv_kernel, compute_dtype=compute_dtype),
        out_shape=(qkv_struct, qkv_struct, qkv_struct),
        grid=(B,),
        in_specs=[
            pl.BlockSpec((1, N, D), lambda b: (b, 0, 0)),
            pl.BlockSpec((1, D), lambda b: (0, 0)),
            pl.BlockSpec((1, D), lambda b: (0, 0)),
            pl.BlockSpec((D, HD), lambda b: (0, 0)),
            pl.BlockSpec((D, HD), lambda b: (0, 0)),
            pl.BlockSpec((D, HD), lambda b: (0, 0)),
        ],
        out_specs=(
            pl.BlockSpec((1, N, HD), lambda b: (b, 0, 0)),
            pl.BlockSpec((1, N, HD), lambda b: (b, 0, 0)),
            pl.BlockSpec((1, N, HD), lambda b: (b, 0, 0)),
        ),
        compiler_params=pltpu.CompilerParams(
            dimension_semantics=("parallel",)),
    )(x, gamma, beta, wq, wk, wv)

    # --- glue: pure row-major reshapes (bitcasts, no data movement) -----------
    # (B, N, H*Dh) -> (B, H, N, Dh) reproduces torch's head scramble exactly.
    q = q.reshape(B, heads, N, dimheads)
    k = k.reshape(B, heads, N, dimheads)
    v = v.reshape(B, heads, N, dimheads)

    # --- kernel 2: fused all-heads attention + output projection --------------
    # TODO(synk): for long sequences (N >~ 2K) tile the KV axis flash-style
    # (online softmax + VMEM accumulator) instead of materializing (H, N, N),
    # and tile N in kernel 1 / set vmem_limit_bytes for v7x's 64 MiB VMEM.
    out = pl.pallas_call(
        functools.partial(attn_proj_kernel, scale=scale, heads=heads,
                          compute_dtype=compute_dtype),
        out_shape=jax.ShapeDtypeStruct((B, N, D), jnp.float32),
        grid=(B,),
        in_specs=[
            pl.BlockSpec((1, heads, N, dimheads), lambda b: (b, 0, 0, 0)),
            pl.BlockSpec((1, heads, N, dimheads), lambda b: (b, 0, 0, 0)),
            pl.BlockSpec((1, heads, N, dimheads), lambda b: (b, 0, 0, 0)),
            pl.BlockSpec((heads, dimheads, D), lambda b: (0, 0, 0)),
        ],
        out_specs=pl.BlockSpec((1, N, D), lambda b: (b, 0, 0)),
        compiler_params=pltpu.CompilerParams(
            dimension_semantics=("parallel",)),
    )(q, k, v, wo)

    return out


# ------------------------------ pure-JAX reference ------------------------------

def ref_forward(x, params, heads, dimheads):
    B, N, D = x.shape
    mean = x.mean(-1, keepdims=True)
    var = ((x - mean) ** 2).mean(-1, keepdims=True)
    xn = (x - mean) / jnp.sqrt(var + LN_EPS) * params["gamma"] + params["beta"]
    qkv = xn @ params["w_qkv"]
    qkv = qkv.reshape(B, heads, N, 3, dimheads)       # same quirky view as torch
    q, k, v = qkv[..., 0, :], qkv[..., 1, :], qkv[..., 2, :]
    dots = jnp.einsum("bhnd,bhmd->bhnm", q, k) * dimheads ** (-0.5)
    attn = jax.nn.softmax(dots, axis=-1)
    out = jnp.einsum("bhnm,bhmd->bhnd", attn, v)
    out = jnp.transpose(out, (0, 2, 1, 3)).reshape(B, N, heads * dimheads)
    return out @ params["w_out"]


# ------------------------------ main --------------------------------------------

if __name__ == "__main__":
    B, N, D, H = 2, 8, 32, 4
    Dh = D // H                      # dimheads = dim // heads (default)
    dim_inner = 3 * H * Dh

    key = jax.random.PRNGKey(0)
    k1, k2, k3, k4, k5 = jax.random.split(key, 5)

    x = jax.random.normal(k1, (B, N, D), dtype=jnp.float32)
    params = dict(
        gamma=1.0 + 0.1 * jax.random.normal(k2, (D,), dtype=jnp.float32),
        beta=0.1 * jax.random.normal(k3, (D,), dtype=jnp.float32),
        # stored as (in_features, out_features), i.e. torch weight transposed
        w_qkv=jax.random.normal(k4, (D, dim_inner), dtype=jnp.float32) * (D ** -0.5),
        w_out=jax.random.normal(k5, (H * Dh, D), dtype=jnp.float32) * ((H * Dh) ** -0.5),
    )

    ref = ref_forward(x, params, H, Dh)

    # f32 path: tight check against the reference.
    out = attention_forward(x, params, H, Dh)
    jax.block_until_ready(out)
    assert out.shape == (B, N, D), out.shape
    assert jnp.allclose(out, ref, atol=1e-4, rtol=1e-4), \
        float(jnp.max(jnp.abs(out - ref)))

    # bf16 MXU path (f32 accumulation / LayerNorm / softmax) -- v6e/v7x fast path.
    out_bf16 = attention_forward(x, params, H, Dh, compute_dtype=jnp.bfloat16)
    jax.block_until_ready(out_bf16)
    assert jnp.allclose(out_bf16, ref, atol=5e-2, rtol=5e-2), \
        float(jnp.max(jnp.abs(out_bf16 - ref)))

    print("KERNEL_OK")
</pallas_src>

<mosaic_0001>
module attributes {stable_mosaic.version = 11 : i64} {
  func.func @ln_qkv_kernel(%arg0: i32, %arg1: memref<1x8x32xf32, #tpu.memory_space<vmem>>, %arg2: memref<1x32xf32, #tpu.memory_space<vmem>>, %arg3: memref<1x32xf32, #tpu.memory_space<vmem>>, %arg4: memref<32x32xf32, #tpu.memory_space<vmem>>, %arg5: memref<32x32xf32, #tpu.memory_space<vmem>>, %arg6: memref<32x32xf32, #tpu.memory_space<vmem>>, %arg7: memref<1x8x32xf32, #tpu.memory_space<vmem>>, %arg8: memref<1x8x32xf32, #tpu.memory_space<vmem>>, %arg9: memref<1x8x32xf32, #tpu.memory_space<vmem>>) attributes {dimension_semantics = [#tpu.dimension_semantics<parallel>], iteration_bounds = array<i64: 2>, scalar_prefetch = 0 : i64, scratch_operands = 0 : i64, tpu.core_type = #tpu.core_type<tc>, window_params = [{transform_indices = @transform_0, window_bounds = array<i64: 1, 8, 32>}, {pipeline_mode = #tpu.pipeline_mode<synchronous>, transform_indices = @transform_1, window_bounds = array<i64: 1, 32>}, {pipeline_mode = #tpu.pipeline_mode<synchronous>, transform_indices = @transform_2, window_bounds = array<i64: 1, 32>}, {pipeline_mode = #tpu.pipeline_mode<synchronous>, transform_indices = @transform_3, window_bounds = array<i64: 32, 32>}, {pipeline_mode = #tpu.pipeline_mode<synchronous>, transform_indices = @transform_4, window_bounds = array<i64: 32, 32>}, {pipeline_mode = #tpu.pipeline_mode<synchronous>, transform_indices = @transform_5, window_bounds = array<i64: 32, 32>}, {transform_indices = @transform_6, window_bounds = array<i64: 1, 8, 32>}, {transform_indices = @transform_7, window_bounds = array<i64: 1, 8, 32>}, {transform_indices = @transform_8, window_bounds = array<i64: 1, 8, 32>}]} {
    %c0 = arith.constant 0 : index
    %c0_0 = arith.constant 0 : index
    %c0_1 = arith.constant 0 : index
    %0 = vector.load %arg1[%c0, %c0_0, %c0_1] : memref<1x8x32xf32, #tpu.memory_space<vmem>>, vector<1x8x32xf32>
    %1 = vector.shape_cast %0 : vector<1x8x32xf32> to vector<8x32xf32>
    %cst = arith.constant dense<0.000000e+00> : vector<8xf32>
    %2 = vector.multi_reduction <add>, %1, %cst [1] : vector<8x32xf32> to vector<8xf32>
    %3 = vector.shape_cast %2 : vector<8xf32> to vector<8x1xf32>
    %cst_2 = arith.constant 3.200000e+01 : f32
    %4 = vector.broadcast %cst_2 : f32 to vector<8x1xf32>
    %5 = arith.divf %3, %4 : vector<8x1xf32>
    %6 = vector.broadcast %5 : vector<8x1xf32> to vector<8x32xf32>
    %7 = arith.subf %1, %6 : vector<8x32xf32>
    %8 = arith.mulf %7, %7 : vector<8x32xf32>
    %cst_3 = arith.constant dense<0.000000e+00> : vector<8xf32>
    %9 = vector.multi_reduction <add>, %8, %cst_3 [1] : vector<8x32xf32> to vector<8xf32>
    %10 = vector.shape_cast %9 : vector<8xf32> to vector<8x1xf32>
    %cst_4 = arith.constant 3.200000e+01 : f32
    %11 = vector.broadcast %cst_4 : f32 to vector<8x1xf32>
    %12 = arith.divf %10, %11 : vector<8x1xf32>
    %13 = vector.broadcast %5 : vector<8x1xf32> to vector<8x32xf32>
    %14 = arith.subf %1, %13 : vector<8x32xf32>
    %cst_5 = arith.constant 9.99999974E-6 : f32
    %15 = vector.broadcast %cst_5 : f32 to vector<8x1xf32>
    %16 = arith.addf %12, %15 : vector<8x1xf32>
    %17 = math.rsqrt %16 : vector<8x1xf32>
    %18 = vector.broadcast %17 : vector<8x1xf32> to vector<8x32xf32>
    %19 = arith.mulf %14, %18 : vector<8x32xf32>
    %c0_6 = arith.constant 0 : index
    %c0_7 = arith.constant 0 : index
    %20 = vector.load %arg2[%c0_6, %c0_7] : memref<1x32xf32, #tpu.memory_space<vmem>>, vector<1x32xf32>
    %21 = vector.shape_cast %20 : vector<1x32xf32> to vector<32xf32>
    %22 = vector.shape_cast %21 : vector<32xf32> to vector<1x32xf32>
    %23 = vector.broadcast %22 : vector<1x32xf32> to vector<8x32xf32>
    %24 = arith.mulf %19, %23 : vector<8x32xf32>
    %c0_8 = arith.constant 0 : index
    %c0_9 = arith.constant 0 : index
    %25 = vector.load %arg3[%c0_8, %c0_9] : memref<1x32xf32, #tpu.memory_space<vmem>>, vector<1x32xf32>
    %26 = vector.shape_cast %25 : vector<1x32xf32> to vector<32xf32>
    %27 = vector.shape_cast %26 : vector<32xf32> to vector<1x32xf32>
    %28 = vector.broadcast %27 : vector<1x32xf32> to vector<8x32xf32>
    %29 = arith.addf %24, %28 : vector<8x32xf32>
    %c0_10 = arith.constant 0 : index
    %c0_11 = arith.constant 0 : index
    %30 = vector.load %arg4[%c0_10, %c0_11] : memref<32x32xf32, #tpu.memory_space<vmem>>, vector<32x32xf32>
    %cst_12 = arith.constant dense<0.000000e+00> : vector<8x32xf32>
    %31 = tpu.matmul %29, %30, %cst_12 {dimension_numbers = #tpu.dot_dimension_numbers<[1], [0], [0], [1], [0, 0, 1, 1], [], []>} : vector<8x32xf32>, vector<32x32xf32>, vector<8x32xf32> -> vector<8x32xf32>
    %c0_13 = arith.constant 0 : index
    %c0_14 = arith.constant 0 : index
    %c0_15 = arith.constant 0 : index
    %32 = vector.load %arg7[%c0_13, %c0_14, %c0_15] : memref<1x8x32xf32, #tpu.memory_space<vmem>>, vector<1x8x32xf32>
    %33 = vector.shape_cast %32 : vector<1x8x32xf32> to vector<8x32xf32>
    %34 = vector.shape_cast %31 : vector<8x32xf32> to vector<1x8x32xf32>
    tpu.vector_store %arg7[%c0_13, %c0_14, %c0_15], %34 {strides = array<i32>} : memref<1x8x32xf32, #tpu.memory_space<vmem>>, vector<1x8x32xf32>,
    %c0_16 = arith.constant 0 : index
    %c0_17 = arith.constant 0 : index
    %35 = vector.load %arg5[%c0_16, %c0_17] : memref<32x32xf32, #tpu.memory_space<vmem>>, vector<32x32xf32>
    %cst_18 = arith.constant dense<0.000000e+00> : vector<8x32xf32>
    %36 = tpu.matmul %29, %35, %cst_18 {dimension_numbers = #tpu.dot_dimension_numbers<[1], [0], [0], [1], [0, 0, 1, 1], [], []>} : vector<8x32xf32>, vector<32x32xf32>, vector<8x32xf32> -> vector<8x32xf32>
    %c0_19 = arith.constant 0 : index
    %c0_20 = arith.constant 0 : index
    %c0_21 = arith.constant 0 : index
    %37 = vector.load %arg8[%c0_19, %c0_20, %c0_21] : memref<1x8x32xf32, #tpu.memory_space<vmem>>, vector<1x8x32xf32>
    %38 = vector.shape_cast %37 : vector<1x8x32xf32> to vector<8x32xf32>
    %39 = vector.shape_cast %36 : vector<8x32xf32> to vector<1x8x32xf32>
    tpu.vector_store %arg8[%c0_19, %c0_20, %c0_21], %39 {strides = array<i32>} : memref<1x8x32xf32, #tpu.memory_space<vmem>>, vector<1x8x32xf32>,
    %c0_22 = arith.constant 0 : index
    %c0_23 = arith.constant 0 : index
    %40 = vector.load %arg6[%c0_22, %c0_23] : memref<32x32xf32, #tpu.memory_space<vmem>>, vector<32x32xf32>
    %cst_24 = arith.constant dense<0.000000e+00> : vector<8x32xf32>
    %41 = tpu.matmul %29, %40, %cst_24 {dimension_numbers = #tpu.dot_dimension_numbers<[1], [0], [0], [1], [0, 0, 1, 1], [], []>} : vector<8x32xf32>, vector<32x32xf32>, vector<8x32xf32> -> vector<8x32xf32>
    %c0_25 = arith.constant 0 : index
    %c0_26 = arith.constant 0 : index
    %c0_27 = arith.constant 0 : index
    %42 = vector.load %arg9[%c0_25, %c0_26, %c0_27] : memref<1x8x32xf32, #tpu.memory_space<vmem>>, vector<1x8x32xf32>
    %43 = vector.shape_cast %42 : vector<1x8x32xf32> to vector<8x32xf32>
    %44 = vector.shape_cast %41 : vector<8x32xf32> to vector<1x8x32xf32>
    tpu.vector_store %arg9[%c0_25, %c0_26, %c0_27], %44 {strides = array<i32>} : memref<1x8x32xf32, #tpu.memory_space<vmem>>, vector<1x8x32xf32>,
    return
  }
  func.func @transform_0(%arg0: i32) -> (i32, i32, i32) {
    %c0_i32 = arith.constant 0 : i32
    %c0_i32_0 = arith.constant 0 : i32
    %c0_i32_1 = arith.constant 0 : i32
    return %arg0, %c0_i32, %c0_i32_0 : i32, i32, i32
  }
  func.func @transform_1(%arg0: i32) -> (i32, i32) {
    %c0_i32 = arith.constant 0 : i32
    %c0_i32_0 = arith.constant 0 : i32
    %c0_i32_1 = arith.constant 0 : i32
    return %c0_i32, %c0_i32_0 : i32, i32
  }
  func.func @transform_2(%arg0: i32) -> (i32, i32) {
    %c0_i32 = arith.constant 0 : i32
    %c0_i32_0 = arith.constant 0 : i32
    %c0_i32_1 = arith.constant 0 : i32
    return %c0_i32, %c0_i32_0 : i32, i32
  }
  func.func @transform_3(%arg0: i32) -> (i32, i32) {
    %c0_i32 = arith.constant 0 : i32
    %c0_i32_0 = arith.constant 0 : i32
    %c0_i32_1 = arith.constant 0 : i32
    return %c0_i32, %c0_i32_0 : i32, i32
  }
  func.func @transform_4(%arg0: i32) -> (i32, i32) {
    %c0_i32 = arith.constant 0 : i32
    %c0_i32_0 = arith.constant 0 : i32
    %c0_i32_1 = arith.constant 0 : i32
    return %c0_i32, %c0_i32_0 : i32, i32
  }
  func.func @transform_5(%arg0: i32) -> (i32, i32) {
    %c0_i32 = arith.constant 0 : i32
    %c0_i32_0 = arith.constant 0 : i32
    %c0_i32_1 = arith.constant 0 : i32
    return %c0_i32, %c0_i32_0 : i32, i32
  }
  func.func @transform_6(%arg0: i32) -> (i32, i32, i32) {
    %c0_i32 = arith.constant 0 : i32
    %c0_i32_0 = arith.constant 0 : i32
    %c0_i32_1 = arith.constant 0 : i32
    return %arg0, %c0_i32, %c0_i32_0 : i32, i32, i32
  }
  func.func @transform_7(%arg0: i32) -> (i32, i32, i32) {
    %c0_i32 = arith.constant 0 : i32
    %c0_i32_0 = arith.constant 0 : i32
    %c0_i32_1 = arith.constant 0 : i32
    return %arg0, %c0_i32, %c0_i32_0 : i32, i32, i32
  }
  func.func @transform_8(%arg0: i32) -> (i32, i32, i32) {
    %c0_i32 = arith.constant 0 : i32
    %c0_i32_0 = arith.constant 0 : i32
    %c0_i32_1 = arith.constant 0 : i32
    return %arg0, %c0_i32, %c0_i32_0 : i32, i32, i32
  }
}

</mosaic_0001>

<bundles_post_ra>
// kernel: tpu_custom_call.1
= control target key start
LH: loop header
LB: loop body
LE: loop exit
PB: predicated region body
PF: predicated region fallthrough
CT: control target
= control target key end

     0   :  { %s1471_s0 = inlined_call_operand.hbm [shape: f32[2,8,32], index: 0, kind: input, shape index: {}]   ;;  %s1472_s1 = inlined_call_operand.hbm [shape: f32[1,32], index: 1, kind: input, shape index: {}]   ;;  %s1473_s2 = inlined_call_operand.vmem [shape: f32[1,32], index: 2, kind: input, shape index: {}]   ;;  %s1474_s3 = inlined_call_operand.hbm [shape: f32[32,32], index: 3, kind: input, shape index: {}]   ;;  %s1475_s4 = inlined_call_operand.hbm [shape: f32[32,32], index: 4, kind: input, shape index: {}]   ;;  %s1476_s5 = inlined_call_operand.hbm [shape: f32[32,32], index: 5, kind: input, shape index: {}]   ;;  %s1477_s6 = inlined_call_operand.hbm [shape: f32[2,8,32], index: 6, kind: output, shape index: {0}]   ;;  %s1478_s7 = inlined_call_operand.hbm [shape: f32[2,8,32], index: 7, kind: output, shape index: {1}]   ;;  %s1479_s8 = inlined_call_operand.hbm [shape: f32[2,8,32], index: 8, kind: output, shape index: {2}]  }
   0x1   :  { %1485 = sst [smem:[#allocation22_spill]] %s1471_s0 }
   0x2   :  { %1486 = sst [smem:[#allocation23_spill]] %s1472_s1 }
   0x3   :  { %1487 = sst [smem:[#allocation24_spill]] %s1474_s3 }
   0x4   :  { %1488 = sst [smem:[#allocation25_spill]] %s1475_s4 }
   0x5   :  { %14 = vsyncpa [#allocation3], 0 }
   0x6   :  { %16 = vsyncpa [#allocation3 + $0x1], 0 }
   0x7   :  { %17 = vsyncpa [#allocation6], 0 }
   0x8   :  { %18 = vsyncpa [#allocation9], 0 }
   0x9   :  { %19 = vsyncpa [#allocation4], 0 }
   0xa   :  { %21 = vsyncpa [#allocation4 + $0x1], 0 }
   0xb   :  { %22 = vsyncpa [#allocation13], 0 }
   0xc   :  { %24 = vsyncpa [#allocation13 + $0x1], 0  ;;  %s1222_s27 = smov 0   ;;  %s1224_s28 = smov 0  }
   0xd   :  { %s1226_s29 = smov 0   ;;  %s1228_s30 = smov 0  }
   0xe LB: > { %s1489_s1 = sld [smem:[#allocation23_spill]]  ;;  %s1246_s12 = sadd.s32 4294967295, %s1168_s30   ;;  %s1168_s30 = sphi %s1228_s30, %s1514_s30   ;;  %s1164_s29 = sphi %s1226_s29, %s1513_s29   ;;  %s1160_s28 = sphi %s1224_s28, %s1512_s28   ;;  %s1156_s27 = sphi %s1222_s27, %s1511_s27  }
   0xf   : > { %p750_p0 = scmp.ge.s32.totalorder %s1168_s30, 1  ;;  %p51_p1 = scmp.eq.s32.totalorder %s1246_s12, 0 }
  0x10   : > { %p244_p2 = scmp.lt.s32.totalorder %s1168_s30, 3  ;;  %s1170_s14 = smov [#allocation5]  }
  0x11   : > { %s258_s15 = sshll.u32 %s1170_s14, 4  ;;  %s1491_s4 = sld [smem:[#allocation25_spill]]  ;;  %s259_s15 = int_to_ptr.vmem [resolvable:$true] %s258_s15 }
  0x12   : > { %p1251_p3 = pnand %p750_p0, %p244_p2  ;;  %s1493_s3 = sld [smem:[#allocation24_spill]] }
  0x13   : > { %s1171_s23 = smov [#allocation8]   ;;  %s1172_s25 = smov 128  }
  0x14   : > { %s256_s11 = sshll.u32 %s1489_s1, 4  ;;  %p802_p5 = pneg %p1251_p3  ;;  %s257_s11 = int_to_ptr.hbm [resolvable:$true] %s256_s11 }
  0x15   : > { %s286_s24 = sshll.u32 %s1171_s23, 4  ;;  %s1173_s26 = smov 8   ;;  %s287_s24 = int_to_ptr.vmem [resolvable:$true] %s286_s24 }
  0x16   : > { %p1263_p6 = pnand %p802_p5, %p51_p1  ;;  %s298_s14 = sshll.u32 %s1476_s5, 4  ;;  %s299_s14 = int_to_ptr.hbm [resolvable:$true] %s298_s14 }
  0x17   : > { %s284_s18 = sshll.u32 %s1491_s4, 4  ;;  %s1174_s16 = smov [#allocation7]   ;;  %s285_s18 = int_to_ptr.hbm [resolvable:$true] %s284_s18 }
  0x18   : > { %s270_s22 = sshll.u32 %s1493_s3, 4  ;;  %s1283_s20 = sadd.s32 1, %s1168_s30   ;;  %s271_s22 = int_to_ptr.hbm [resolvable:$true] %s270_s22 }
  0x19   : > { %805 = dma.hbm_to_vmem [thread:$0]  (!%p1263_p6), %s257_s11, 16, %s259_s15, [#allocation6]  }
  0x1a   : > { %811 = dma.hbm_to_vmem [thread:$0]  (!%p1263_p6), %s285_s18, 512, %s287_s24, [#allocation9], %s1172_s25, %s1172_s25, %s1173_s26  }
  0x1b   : > { %s272_s11 = sshll.u32 %s1174_s16, 4  ;;  %s1175_s15 = smov [#allocation10]   ;;  %s273_s11 = int_to_ptr.vmem [resolvable:$true] %s272_s11 }
  0x1c   : > { %808 = dma.hbm_to_vmem [thread:$0]  (!%p1263_p6), %s271_s22, 512, %s273_s11, [#allocation6], %s1172_s25, %s1172_s25, %s1173_s26  }
  0x1d   : > { %s300_s17 = sshll.u32 %s1175_s15, 4  ;;  %s1480_s18 = sadd.s32 4294967294, %s1168_s30   ;;  %s301_s17 = int_to_ptr.vmem [resolvable:$true] %s300_s17 }
  0x1e   : > { %814 = dma.hbm_to_vmem [thread:$0]  (!%p1263_p6), %s299_s14, 512, %s301_s17, [#allocation9], %s1172_s25, %s1172_s25, %s1173_s26  }
  0x1f   : > { %s34_s21 = ssub.s32 %s1168_s30, %s1283_s20  ;;  %s37_s23 = sadd.s32 1, %s1164_s29 }
  0x20   : > { %p35_p7 = scmp.eq.s32.totalorder %s34_s21, 0  ;;  %p44_p8 = scmp.ne.s32.totalorder %s1164_s29, %s1160_s28 }
  0x21   : > { %p45_p9 = scmp.eq.s32.totalorder %s1168_s30, 0  ;;  %p50_p10 = scmp.ne.s32.totalorder %s1160_s28, %s1156_s27 }
  0x22   : > { %s1294_s22 = scalar_select %p35_p7, %s1164_s29, %s37_s23  }
  0x23   : > { %p1296_p11 = por %p45_p9, %p44_p8  ;;  %p1302_p12 = por %p51_p1, %p50_p10 }
  0x24   : > { %p179_p13 = scmp.eq.s32.totalorder %s1246_s12, 1  ;;  %p185_p0 = scmp.eq.s32.totalorder %s1480_s18, 1 }
  0x25   : > { %p833_p2 = scmp.lt.s32.totalorder %s1168_s30, 2  ;;  %s314_s25 = sand.u32 1, %s1164_s29  }
  0x26   : > { %p1311_p5 = por %p179_p13, %p44_p8  ;;  %p1315_p6 = por %p185_p0, %p50_p10 }
  0x27   : > { %s756_s10 = sshll.u32 %s314_s25, 3  ;;  %s757_s14 = sshll.u32 %s1168_s30, 3 }
  0x28   : > { %s1498_s0 = sld [smem:[#allocation22_spill]]  ;;  %s318_s17 = scalar_lea.vmem [#allocation2], %s756_s10 }
  0x29   : > { %s326_s21 = sshll.u32 %s318_s17, 4  ;;  %p1325_p7 = pnand %p833_p2, %p1296_p11  ;;  %s327_s21 = int_to_ptr.vmem [resolvable:$true] %s326_s21 }
  0x2a   : > { %s315_s1 = scalar_lea.sflag [#allocation3], %s314_s25 }
  0x2b   : > { %p1008_p9 = pneg %p1325_p7 }
  0x2e   : > { %s322_s15 = scalar_lea.hbm %s1498_s0, %s757_s14  ;;  %s1011_s16 = scalar_lea.hbm %s1498_s0, 16 }
  0x2f   : > { %s324_s23 = sshll.u32 %s322_s15, 4  ;;  %s325_s23 = int_to_ptr.hbm [resolvable:$true] %s324_s23 }
  0x30   : > { %s1004_s3 = sshra.s32 %s325_s23, 4  ;;  %s1005_s3 = int_to_ptr.hbm [resolvable:$true] %s1004_s3 }
  0x31   : > { %s1006_s4 = scalar_lea.hbm %s1005_s3, 8  ;;  %p1012_p11 = scmp.lt.s32.totalorder %s1005_s3, %s1498_s0 }
  0x32   : > { %p1007_p8 = scmp.ne.s32.totalorder %s1005_s3, %s1006_s4  ;;  %p1013_p0 = scmp.lt.s32.totalorder %s1011_s16, %s1006_s4 }
  0x34   : > { %p1009_p10 = pnand %p1008_p9, %p1007_p8  ;;  %p1014_p2 = por %p1013_p0, %p1012_p11 }
  0x36   : > { %p1010_p13 = pneg %p1009_p10 }
  0x38   : > { %p1015_p4 = pnand %p1014_p2, %p1010_p13 }
  0x3a   : > { %1018 = shalt.err (!%p1015_p4)
}
  0x3b   : > { %818 = dma.hbm_to_vmem [thread:$0]  (!%p1325_p7), %s325_s23, 128, %s327_s21, %s315_s1  }
  0x3c   : > { %335 = sbr.rel (%p1251_p3) target bundleno = 508 (0x1fc), region = 44 }
  0x41   : > { %s1342_s25 = sand.u32 1, %s1160_s28  }
  0x42   : > { %s1345_s15 = sshll.u32 %s1342_s25, 3  ;;  %s338_s3 = scalar_lea.sflag [#allocation3], %s1342_s25 }
  0x43   : > { %s341_s4 = scalar_lea.vmem [#allocation2], %s1345_s15 }
  0x44   : > { %1135 = dma.done.wait (%p1302_p12), %s338_s3, 128  }
  0x45   : > { %1137 = vsyncadd (%p1302_p12), %s338_s3, 4294967168 }
  0x46   : > { %1139 = dma.done.wait (%p51_p1), [#allocation6], 528  }
  0x47   : > { %1141 = vsyncadd (%p51_p1), [#allocation6], 4294966768 }
  0x48   : > { %1143 = dma.done.wait (%p51_p1), [#allocation9], 1024  }
  0x49   : > { %1145 = vsyncadd (%p51_p1), [#allocation9], 4294966272  ;;  %vm406_vm0 = vcmask 261120   ;;  %v405_v0 = vld [vmem:[%s341_s4] sm:$0xff]  ;;  %v1176_v2 = vmov 32.0   ;;  %v446_v23 = vld [vmem:[#allocation7] sm:$0xff] }
  0x4a   : > { %v407_v1 = vsel %vm406_vm0, %v405_v0, 0.0  ;;  %880 = vrcp.f32 %v1176_v2  ;;  %v449_v14 = vld [vmem:[#allocation7 + $0x18] sm:$0xff]  ;;  %v448_v17 = vld [vmem:[#allocation7 + $0x10] sm:$0xff]  ;;  %v447_v20 = vld [vmem:[#allocation7 + $0x8] sm:$0xff]  ;;  %s773_s18 = sshll.u32 %s1246_s12, 3  ;;  %s397_s11 = scalar_lea.vmem [#allocation12], %s1345_s15 }
  0x4b   : > { %408 = vadd.xlane.f32.xlu0 %v407_v1  ;;  %v477_v15 = vld [vmem:[#allocation8 + $0x18] sm:$0xff]  ;;  %465 = vmatpush.msra.mxu0 %v449_v14  ;;  %v476_v18 = vld [vmem:[#allocation8 + $0x10] sm:$0xff]  ;;  %v475_v21 = vld [vmem:[#allocation8 + $0x8] sm:$0xff]  ;;  %s545_s21 = scalar_lea.hbm %s1477_s6, %s773_s18  ;;  %s559_s16 = scalar_lea.hbm %s1478_s7, %s773_s18 }
  0x4c   : > { %v502_v16 = vld [vmem:[#allocation10 + $0x18] sm:$0xff]  ;;  %490 = vmatpush.msra.mxu1 %v477_v15  ;;  %v501_v19 = vld [vmem:[#allocation10 + $0x10] sm:$0xff]  ;;  %v500_v22 = vld [vmem:[#allocation10 + $0x8] sm:$0xff]  ;;  %s1378_s24 = sshll.u32 %s397_s11, 4  ;;  %s390_s3 = scalar_lea.vmem [#allocation11], %s1345_s15 }
  0x4d   : > { %515 = vmatpush.msra.mxu2 %v502_v16  ;;  %466 = vmatpush.msra.mxu0 %v448_v17  ;;  %v474_v24 = vld [vmem:[#allocation8] sm:$0xff]  ;;  %v878_v35 = vld [vmem:[#allocation5] ss:$0 sm:$0xff]  ;;  %v879_v38 = vld [vmem:[%s1473_s2] ss:$0 sm:$0xff]  ;;  %1500 = sst [smem:[#allocation20_spill]] %s1378_s24  ;;  %s573_s10 = scalar_lea.hbm %s1479_s8, %s773_s18 }
  0x4e   : > { %491 = vmatpush.msra.mxu1 %v476_v18  ;;  %v499_v25 = vld [vmem:[#allocation10] sm:$0xff]  ;;  %s1381_s4 = sshll.u32 %s390_s3, 4  ;;  %s1383_s1 = sshll.u32 %s545_s21, 4  ;;  %s548_s4 = int_to_ptr.vmem [resolvable:$true] %s1381_s4  ;;  %s550_s1 = int_to_ptr.hbm [resolvable:$true] %s1383_s1 }
  0x4f   : > { %516 = vmatpush.msra.mxu2 %v501_v19  ;;  %467 = vmatpush.msra.mxu0 %v447_v20  ;;  %s1385_s13 = sshll.u32 %s559_s16, 4  ;;  %s1484_s14 = scalar_lea.vmem [#allocation14], %s1345_s15 }
  0x50   : > { %v881_v3 = vpop.eup %880  ;;  %492 = vmatpush.msra.mxu1 %v475_v21  ;;  %1501 = sst [smem:[#allocation21_spill]] %s1385_s13  ;;  %s1398_s21 = sshll.u32 %s1484_s14, 4  ;;  %s576_s21 = int_to_ptr.vmem [resolvable:$true] %s1398_s21 }
  0x51   : > { %v411_v4 = vmul.f32 32.0, %v881_v3  ;;  %vm415_vm1 = vweird.f32 %v881_v3  ;;  %517 = vmatpush.msra.mxu2 %v500_v22  ;;  %468 = vmatpush.msra.mxu0 %v446_v23  ;;  %s1400_s16 = sshll.u32 %s573_s10, 4  ;;  %s525_s19 = scalar_lea.sflag [#allocation4], %s1342_s25  ;;  %s578_s16 = int_to_ptr.hbm [resolvable:$true] %s1400_s16 }
  0x52   : > { %493 = vmatpush.msra.mxu1 %v474_v24  ;;  %s1048_s17 = sshra.s32 %s550_s1, 4  ;;  %s1049_s17 = int_to_ptr.hbm [resolvable:$true] %s1048_s17 }
  0x53   : > { %v412_v5 = vsub.f32 1.0, %v411_v4  ;;  %518 = vmatpush.msra.mxu2 %v499_v25  ;;  %s1050_s18 = scalar_lea.hbm %s1049_s17, 8  ;;  %p1055_p12 = scmp.lt.s32.totalorder %s1049_s17, %s1477_s6 }
  0x54   : > { %p1051_p1 = scmp.ne.s32.totalorder %s1049_s17, %s1050_s18 }
  0x55   : > { %v413_v6 = vmul.f32 %v881_v3, %v412_v5 }
  0x56   : > { %p1052_p3 = pnand %p1051_p1, %p1311_p5 }
  0x57   : > { %v414_v7 = vadd.f32 %v881_v3, %v413_v6 }
  0x58   : > { %p1053_p4 = pneg %p1052_p3 }
  0x59   : > { %v416_v8 = vsel %vm415_vm1, %v881_v3, %v414_v7 }
  0xbe   : > { %v409_v9 = vpop.xlane.xlu0 %408 }
  0xbf   : > { %v417_v10 = vmul.f32 %v416_v8, %v409_v9 }
  0xc1   : > { %v418_v11 = vsub.f32 %v405_v0, %v417_v10 }
  0xc3   : > { %v419_v12 = vmul.f32 %v418_v11, %v418_v11 }
  0xc5   : > { %v420_v13 = vsel %vm406_vm0, %v419_v12, 0.0 }
  0xc6   : > { %421 = vadd.xlane.f32.xlu0 %v420_v13 }
 0x139   : > { %v422_v26 = vpop.xlane.xlu0 %421 }
 0x13a   : > { %v423_v27 = vmul.f32 %v422_v26, %v416_v8 }
 0x13c   : > { %v424_v28 = vadd.f32 1e-05, %v423_v27 }
 0x13e   : > { %882 = vrsqrt.f32 %v424_v28  ;;  %vm431_vm3 = vweird.f32 %v424_v28 }
 0x144   : > { %v883_v29 = vpop.eup %882 }
 0x145   : > { %v426_v30 = vmul.f32 %v883_v29, %v424_v28  ;;  %vm432_vm2 = vweird.f32 %v883_v29 }
 0x146   : > { %vm433_vm4 = vmor %vm431_vm3, %vm432_vm2 }
 0x147   : > { %v427_v31 = vmul.f32 %v883_v29, %v426_v30 }
 0x149   : > { %v428_v32 = vmul.f32 0.5, %v427_v31 }
 0x14b   : > { %v429_v33 = vsub.f32 1.5, %v428_v32 }
 0x14d   : > { %v430_v34 = vmul.f32 %v883_v29, %v429_v33 }
 0x14f   : > { %v434_v36 = vsel %vm433_vm4, %v883_v29, %v430_v34 }
 0x150   : > { %v435_v37 = vmul.f32 %v434_v36, %v418_v11 }
 0x152   : > { %v440_v39 = vmul.f32 %v878_v35, %v435_v37 }
 0x154   : > { %v445_v40 = vadd.f32 %v879_v38, %v440_v39 }
 0x156   : > { %767 = vmatmul.msk.f32.vlgmr.msra.gmra.mxu0 %vm406_vm0, %v445_v40  ;;  %768 = vmatmul.msk.f32.vlgmr.msra.gmra.mxu1 %vm406_vm0, %v445_v40 }
 0x157   : > { %769 = vmatmul.msk.f32.vlgmr.msra.gmra.mxu2 %vm406_vm0, %v445_v40 }
 0x1d3   : > { %v470_v41 = vpop.f32.mrf.mxu0  ;;  %v495_v42 = vpop.f32.mrf.mxu1 }
 0x1d4   : > { %473 = vst.msk [vmem:[%s390_s3] sm:$0xff] %vm406_vm0, %v470_v41  ;;  %s1054_s3 = scalar_lea.hbm %s1477_s6, 16 }
 0x1d5   : > { %498 = vst.msk [vmem:[%s397_s11] sm:$0xff] %vm406_vm0, %v495_v42  ;;  %p1056_p7 = scmp.lt.s32.totalorder %s1054_s3, %s1050_s18 }
 0x1d7   : > { %p1057_p8 = por %p1056_p7, %p1055_p12 }
 0x1d9   : > { %p1058_p9 = pnand %p1057_p8, %p1053_p4 }
 0x1db   : > { %1061 = shalt.err (!%p1058_p9)
}
 0x1dc   : > { %s1502_s25 = sld [smem:[#allocation21_spill]]  ;;  %s1503_s11 = sand.u32 1, %s1246_s12  }
 0x1dd   : > { %796 = dma.vmem_to_hbm [thread:$0]  (%p1311_p5), %s548_s4, 128, %s550_s1, %s525_s19  }
 0x1de   : > { %s1416_s10 = scalar_lea.sflag [#allocation13], %s1503_s11  ;;  %s1082_s17 = scalar_lea.hbm %s1478_s7, 16 }
 0x1e2   : > { %s1504_s14 = int_to_ptr.hbm [resolvable:$true] %s1502_s25 }
 0x1e3   : > { %s1076_s23 = sshra.s32 %s1504_s14, 4  ;;  %s1077_s23 = int_to_ptr.hbm [resolvable:$true] %s1076_s23 }
 0x1e4   : > { %s1078_s24 = scalar_lea.hbm %s1077_s23, 8  ;;  %p1083_p0 = scmp.lt.s32.totalorder %s1077_s23, %s1478_s7 }
 0x1e5   : > { %p1079_p10 = scmp.ne.s32.totalorder %s1077_s23, %s1078_s24  ;;  %p1084_p2 = scmp.lt.s32.totalorder %s1082_s17, %s1078_s24 }
 0x1e7   : > { %p1080_p13 = pnand %p1079_p10, %p1311_p5  ;;  %p1085_p1 = por %p1084_p2, %p1083_p0 }
 0x1e9   : > { %p1081_p11 = pneg %p1080_p13 }
 0x1eb   : > { %p1086_p3 = pnand %p1085_p1, %p1081_p11 }
 0x1ed   : > { %1089 = shalt.err (!%p1086_p3)
}
 0x1ee   : > { %s1505_s12 = smov %s1504_s14  ;;  %s1506_s4 = sld [smem:[#allocation20_spill]]  ;;  %v520_v43 = vpop.f32.mrf.mxu2 }
 0x1ef   : > { %s1508_s14 = scalar_lea.vmem [#allocation14], %s1345_s15  ;;  %s1104_s19 = sshra.s32 %s578_s16, 4  ;;  %s1105_s19 = int_to_ptr.hbm [resolvable:$true] %s1104_s19 }
 0x1f0   : > { %523 = vst.msk [vmem:[%s1508_s14] sm:$0xff] %vm406_vm0, %v520_v43  ;;  %s1106_s11 = scalar_lea.hbm %s1105_s19, 8  ;;  %s1110_s24 = scalar_lea.hbm %s1479_s8, 16 }
 0x1f1   : > { %p1107_p4 = scmp.ne.s32.totalorder %s1105_s19, %s1106_s11  ;;  %p1111_p8 = scmp.lt.s32.totalorder %s1105_s19, %s1479_s8 }
 0x1f2   : > { %p1112_p9 = scmp.lt.s32.totalorder %s1110_s24, %s1106_s11 }
 0x1f3   : > { %p1108_p12 = pnand %p1107_p4, %p1311_p5 }
 0x1f4   : > { %s1507_s1 = int_to_ptr.vmem [resolvable:$true] %s1506_s4  ;;  %p1113_p10 = por %p1112_p9, %p1111_p8 }
 0x1f5   : > { %797 = dma.vmem_to_hbm [thread:$0]  (%p1311_p5), %s1507_s1, 128, %s1505_s12, %s1416_s10  }
 0x1f6   : > { %p1109_p7 = pneg %p1108_p12 }
 0x1f8   : > { %p1114_p13 = pnand %p1113_p10, %p1109_p7 }
 0x1fa   : > { %1117 = shalt.err (!%p1114_p13)
}
 0x1fb   : > { %798 = dma.vmem_to_hbm [thread:$0]  (%p1311_p5), %s576_s21, 128, %s578_s16, %s1416_s10  }
 0x1fc PF: > { %s589_s15 = sand.u32 1, %s1156_s27   ;;  %p1509_p11 = scmp.ge.s32.totalorder %s1168_s30, 2 }
 0x1fd   : > { %s590_s17 = scalar_lea.sflag [#allocation4], %s589_s15 }
 0x1fe   : > { %p820_p0 = pnand %p1509_p11, %p1315_p6 }
 0x200   : > { %p821_p2 = pneg %p820_p0 }
 0x202   : > { %1147 = dma.done.wait (%p821_p2), %s590_s17, 128  }
 0x203   : > { %1149 = vsyncadd (%p821_p2), %s590_s17, 4294967168  ;;  %s1510_s18 = sadd.s32 4294967294, %s1168_s30  }
 0x204   : > { %s599_s3 = sand.u32 1, %s1510_s18  }
 0x205   : > { %s600_s12 = scalar_lea.sflag [#allocation13], %s599_s3 }
 0x206   : > { %1151 = dma.done.wait (%p821_p2), %s600_s12, 256  }
 0x207   : > { %1153 = vsyncadd (%p821_p2), %s600_s12, 4294967040  ;;  %p27_p5 = scmp.ge.s32.totalorder %s1283_s20, 4   ;;  %s1511_s27 = smov %s1160_s28 }
 0x208   : > { %s1512_s28 = smov %s1164_s29  ;;  %s1513_s29 = smov %s1294_s22 }
 0x209   : > { %s1514_s30 = smov %s1283_s20  ;;  %29 = sbr.rel (!%p27_p5) target bundleno = 14 (0xe), region = 137 }
 0x20e   :  { %616 = vsyncpa [#allocation3], 1 }
 0x20f   :  { %618 = vsyncpa [#allocation3 + $0x1], 1 }
 0x210   :  { %619 = vsyncpa [#allocation6], 1 }
 0x211   :  { %620 = vsyncpa [#allocation9], 1 }
 0x212   :  { %621 = vsyncpa [#allocation4], 1 }
 0x213   :  { %623 = vsyncpa [#allocation4 + $0x1], 1 }
 0x214   :  { %624 = vsyncpa [#allocation13], 1 }
 0x215   :  { %626 = vsyncpa [#allocation13 + $0x1], 1 }

</bundles_post_ra>
